<compile_context>
chip_gen: v7x
topology: tpu7x:2x2x1
jax: 0.10.0
libtpu: 0.0.40
codegen_flags: <defaults>
</compile_context>

<pallas_src>
import inspect

import jax
import jax.numpy as jnp
from jax.experimental import pallas as pl
from jax.experimental.pallas import tpu as pltpu


def _round_up(x, n):
    return (x + n - 1) // n * n


def _supports_pipeline_mode():
    if not hasattr(pl, "Buffered"):
        return False
    try:
        return "pipeline_mode" in inspect.signature(pl.BlockSpec).parameters
    except (TypeError, ValueError):
        return False


_HAS_PIPELINE_MODE = _supports_pipeline_mode()


def _vmem_capacity_bytes():
    try:
        return int(pltpu.get_tpu_info().vmem_capacity_bytes)
    except Exception:
        return 128 * 1024 * 1024  # v5e/v6e default


def _mlp_kernel(x_ref, w1_ref, b1_ref, w2_ref, b2_ref, o_ref):
    # x_ref: (TM, H), w1_ref: (H, BN), b1_ref: (1, BN) f32,
    # w2_ref: (BN, H), b2_ref: (1, H) f32, o_ref: (TM, H).
    x = x_ref[...]
    # First GEMM on the MXU, f32 accumulation.
    h = jnp.dot(x, w1_ref[...], preferred_element_type=jnp.float32)
    h = jnp.maximum(h + b1_ref[...], 0.0)            # bias + ReLU on the VPU
    # Second GEMM on the MXU.
    y = jnp.dot(h.astype(w2_ref.dtype), w2_ref[...],
                preferred_element_type=jnp.float32)
    o_ref[...] = (y + b2_ref[...]).astype(o_ref.dtype)


def ext_comp_mlp(x, w1_t, b1, w2_t, b2, *, compute_dtype=None, out_dtype=None,
                 tm=None):
    """x: (batch, seq, hidden). w1_t: (H, BN), b1: (BN,), w2_t: (BN, H), b2: (H,).

    compute_dtype: optionally cast x / weights (e.g. jnp.bfloat16) before the
    dots; accumulation stays f32. out_dtype defaults to x.dtype.
    """
    batch, seq, hidden = x.shape
    bn = w1_t.shape[1]
    m = batch * seq
    out_dtype = x.dtype if out_dtype is None else out_dtype

    if compute_dtype is not None:
        x = x.astype(compute_dtype)
        # NOTE: pre-cast & store weights in compute_dtype at init time in real
        # use; these astypes are then no-ops.
        w1_t = w1_t.astype(compute_dtype)
        w2_t = w2_t.astype(compute_dtype)

    x2d = x.reshape(m, hidden)                       # view, no HBM round trip
    b1_2d = b1.astype(jnp.float32).reshape(1, bn)    # biases added in f32
    b2_2d = b2.astype(jnp.float32).reshape(1, hidden)

    x_isz = jnp.dtype(x2d.dtype).itemsize
    w_isz = jnp.dtype(w1_t.dtype).itemsize
    o_isz = jnp.dtype(out_dtype).itemsize
    sub = max(8, 32 // min(x_isz, w_isz))            # sublane packing of compute dtype

    vmem_cap = _vmem_capacity_bytes()
    small_vmem = vmem_cap <= 64 * 1024 * 1024        # v7x-class TensorCore (2 TCs)

    def pick_tm(weight_bufs):
        if tm is not None:
            t = tm
        else:
            target = 256 if small_vmem else 512
            resident = weight_bufs * (2 * hidden * bn * w_isz + (hidden + bn) * 4)
            per_row = 2 * hidden * (x_isz + o_isz) + 4 * (hidden + bn)
            budget = int(0.75 * vmem_cap) - resident
            t = max(sub, min(target, (budget // max(per_row, 1)) // sub * sub))
        if m <= t:
            t = _round_up(m, sub)
        if small_vmem and m > 2 * sub and pl.cdiv(m, t) < 2:
            # v7x has 2 TensorCores: keep >= 2 grid steps so both get work.
            t = _round_up(pl.cdiv(m, 2), sub)
        return t

    def run(single_buffer_weights):
        t = pick_tm(1 if single_buffer_weights else 2)
        n_wbuf = 1 if single_buffer_weights else 2

        def resident(shape):
            if single_buffer_weights:
                return pl.BlockSpec(shape, lambda i: (0, 0),
                                    pipeline_mode=pl.Buffered(1))
            return pl.BlockSpec(shape, lambda i: (0, 0))

        # VMEM estimate with the *actual* buffer counts, capped below physical.
        est = (
            n_wbuf * (2 * hidden * bn * w_isz + (hidden + bn) * 4)  # weights + biases
            + 2 * t * hidden * (x_isz + o_isz)                      # x + out tiles, 2-deep
            + t * (hidden + bn) * 4                                 # f32 intermediates
        )
        vmem_limit = min(max(int(1.25 * est), 32 * 1024 * 1024),
                         int(0.875 * vmem_cap))

        return pl.pallas_call(
            _mlp_kernel,
            out_shape=jax.ShapeDtypeStruct((m, hidden), out_dtype),
            grid_spec=pltpu.PrefetchScalarGridSpec(
                num_scalar_prefetch=0,
                grid=(pl.cdiv(m, t),),
                in_specs=[
                    pl.BlockSpec((t, hidden), lambda i: (i, 0)),  # x row tile
                    resident((hidden, bn)),                       # W1^T resident
                    resident((1, bn)),                            # b1 resident (f32)
                    resident((bn, hidden)),                       # W2^T resident
                    resident((1, hidden)),                        # b2 resident (f32)
                ],
                out_specs=pl.BlockSpec((t, hidden), lambda i: (i, 0)),
            ),
            compiler_params=pltpu.CompilerParams(
                dimension_semantics=("parallel",),  # shard row tiles across TCs (v7x)
                vmem_limit_bytes=vmem_limit,
            ),
        )(x2d, w1_t, b1_2d, w2_t, b2_2d)

    if _HAS_PIPELINE_MODE:
        try:
            out2d = run(True)
        except Exception:
            # Buffered(1) not supported by this jax/Mosaic build; use defaults.
            out2d = run(False)
    else:
        out2d = run(False)

    return out2d.reshape(batch, seq, hidden)


def init_params(key, hidden_size, bn_size, dtype=jnp.float32):
    """Deterministic PyTorch-Linear-style init (uniform in +/- 1/sqrt(fan_in))."""
    k1, k2, k3, k4 = jax.random.split(key, 4)
    lim1 = 1.0 / (hidden_size ** 0.5)
    lim2 = 1.0 / (bn_size ** 0.5)
    # Stored already transposed: (in_features, out_features).
    w1_t = jax.random.uniform(k1, (hidden_size, bn_size), dtype, -lim1, lim1)
    b1 = jax.random.uniform(k2, (bn_size,), dtype, -lim1, lim1)
    w2_t = jax.random.uniform(k3, (bn_size, hidden_size), dtype, -lim2, lim2)
    b2 = jax.random.uniform(k4, (hidden_size,), dtype, -lim2, lim2)
    return w1_t, b1, w2_t, b2


if __name__ == "__main__":
    batch, seq, hidden_size, bn_size = 2, 8, 32, 16

    key = jax.random.PRNGKey(0)
    kx, kp = jax.random.split(key)
    x = jax.random.normal(kx, (batch, seq, hidden_size), jnp.float32)
    w1_t, b1, w2_t, b2 = init_params(kp, hidden_size, bn_size)

    out = jax.block_until_ready(ext_comp_mlp(x, w1_t, b1, w2_t, b2))
    ref = jnp.maximum(x @ w1_t + b1, 0.0) @ w2_t + b2
    assert out.shape == (batch, seq, hidden_size)
    assert jnp.allclose(out, ref, atol=1e-5, rtol=1e-5)

    # Second check: multi-tile grid + ragged last row tile (640 rows).
    x2 = jax.random.normal(kx, (4, 160, hidden_size), jnp.float32)
    out2 = jax.block_until_ready(ext_comp_mlp(x2, w1_t, b1, w2_t, b2))
    ref2 = jnp.maximum(x2 @ w1_t + b1, 0.0) @ w2_t + b2
    assert jnp.allclose(out2, ref2, atol=1e-5, rtol=1e-5)

    print("KERNEL_OK")
</pallas_src>

<mosaic_0001>
module attributes {stable_mosaic.version = 11 : i64} {
  func.func @_mlp_kernel(%arg0: i32, %arg1: memref<16x32xf32, #tpu.memory_space<vmem>>, %arg2: memref<32x16xf32, #tpu.memory_space<vmem>>, %arg3: memref<1x16xf32, #tpu.memory_space<vmem>>, %arg4: memref<16x32xf32, #tpu.memory_space<vmem>>, %arg5: memref<1x32xf32, #tpu.memory_space<vmem>>, %arg6: memref<16x32xf32, #tpu.memory_space<vmem>>) attributes {dimension_semantics = [#tpu.dimension_semantics<parallel>], iteration_bounds = array<i64: 1>, scalar_prefetch = 0 : i64, scratch_operands = 0 : i64, tpu.core_type = #tpu.core_type<tc>, window_params = [{transform_indices = @transform_0, window_bounds = array<i64: 16, 32>}, {pipeline_mode = #tpu.pipeline_mode<synchronous>, transform_indices = @transform_1, window_bounds = array<i64: 32, 16>}, {pipeline_mode = #tpu.pipeline_mode<synchronous>, transform_indices = @transform_2, window_bounds = array<i64: 1, 16>}, {pipeline_mode = #tpu.pipeline_mode<synchronous>, transform_indices = @transform_3, window_bounds = array<i64: 16, 32>}, {pipeline_mode = #tpu.pipeline_mode<synchronous>, transform_indices = @transform_4, window_bounds = array<i64: 1, 32>}, {transform_indices = @transform_5, window_bounds = array<i64: 16, 32>}]} {
    %c0 = arith.constant 0 : index
    %c0_0 = arith.constant 0 : index
    %0 = vector.load %arg1[%c0, %c0_0] : memref<16x32xf32, #tpu.memory_space<vmem>>, vector<16x32xf32>
    %c0_1 = arith.constant 0 : index
    %c0_2 = arith.constant 0 : index
    %1 = vector.load %arg2[%c0_1, %c0_2] : memref<32x16xf32, #tpu.memory_space<vmem>>, vector<32x16xf32>
    %cst = arith.constant dense<0.000000e+00> : vector<16x16xf32>
    %2 = tpu.matmul %0, %1, %cst {dimension_numbers = #tpu.dot_dimension_numbers<[1], [0], [0], [1], [0, 0, 1, 1], [], []>} : vector<16x32xf32>, vector<32x16xf32>, vector<16x16xf32> -> vector<16x16xf32>
    %c0_3 = arith.constant 0 : index
    %c0_4 = arith.constant 0 : index
    %3 = vector.load %arg3[%c0_3, %c0_4] : memref<1x16xf32, #tpu.memory_space<vmem>>, vector<1x16xf32>
    %4 = vector.broadcast %3 : vector<1x16xf32> to vector<16x16xf32>
    %5 = arith.addf %2, %4 : vector<16x16xf32>
    %cst_5 = arith.constant 0.000000e+00 : f32
    %6 = vector.broadcast %cst_5 : f32 to vector<16x16xf32>
    %7 = arith.maximumf %5, %6 : vector<16x16xf32>
    %c0_6 = arith.constant 0 : index
    %c0_7 = arith.constant 0 : index
    %8 = vector.load %arg4[%c0_6, %c0_7] : memref<16x32xf32, #tpu.memory_space<vmem>>, vector<16x32xf32>
    %cst_8 = arith.constant dense<0.000000e+00> : vector<16x32xf32>
    %9 = tpu.matmul %7, %8, %cst_8 {dimension_numbers = #tpu.dot_dimension_numbers<[1], [0], [0], [1], [0, 0, 1, 1], [], []>} : vector<16x16xf32>, vector<16x32xf32>, vector<16x32xf32> -> vector<16x32xf32>
    %c0_9 = arith.constant 0 : index
    %c0_10 = arith.constant 0 : index
    %10 = vector.load %arg5[%c0_9, %c0_10] : memref<1x32xf32, #tpu.memory_space<vmem>>, vector<1x32xf32>
    %11 = vector.broadcast %10 : vector<1x32xf32> to vector<16x32xf32>
    %12 = arith.addf %9, %11 : vector<16x32xf32>
    %c0_11 = arith.constant 0 : index
    %c0_12 = arith.constant 0 : index
    %13 = vector.load %arg6[%c0_11, %c0_12] : memref<16x32xf32, #tpu.memory_space<vmem>>, vector<16x32xf32>
    tpu.vector_store %arg6[%c0_11, %c0_12], %12 {strides = array<i32>} : memref<16x32xf32, #tpu.memory_space<vmem>>, vector<16x32xf32>,
    return
  }
  func.func @transform_0(%arg0: i32) -> (i32, i32) {
    %c0_i32 = arith.constant 0 : i32
    %c0_i32_0 = arith.constant 0 : i32
    return %arg0, %c0_i32 : i32, i32
  }
  func.func @transform_1(%arg0: i32) -> (i32, i32) {
    %c0_i32 = arith.constant 0 : i32
    %c0_i32_0 = arith.constant 0 : i32
    %c0_i32_1 = arith.constant 0 : i32
    return %c0_i32, %c0_i32_0 : i32, i32
  }
  func.func @transform_2(%arg0: i32) -> (i32, i32) {
    %c0_i32 = arith.constant 0 : i32
    %c0_i32_0 = arith.constant 0 : i32
    %c0_i32_1 = arith.constant 0 : i32
    return %c0_i32, %c0_i32_0 : i32, i32
  }
  func.func @transform_3(%arg0: i32) -> (i32, i32) {
    %c0_i32 = arith.constant 0 : i32
    %c0_i32_0 = arith.constant 0 : i32
    %c0_i32_1 = arith.constant 0 : i32
    return %c0_i32, %c0_i32_0 : i32, i32
  }
  func.func @transform_4(%arg0: i32) -> (i32, i32) {
    %c0_i32 = arith.constant 0 : i32
    %c0_i32_0 = arith.constant 0 : i32
    %c0_i32_1 = arith.constant 0 : i32
    return %c0_i32, %c0_i32_0 : i32, i32
  }
  func.func @transform_5(%arg0: i32) -> (i32, i32) {
    %c0_i32 = arith.constant 0 : i32
    %c0_i32_0 = arith.constant 0 : i32
    return %arg0, %c0_i32 : i32, i32
  }
}

module attributes {stable_mosaic.version = 11 : i64} {
  func.func @_mlp_kernel(%arg0: i32, %arg1: memref<16x32xf32, #tpu.memory_space<vmem>>, %arg2: memref<32x16xf32, #tpu.memory_space<vmem>>, %arg3: memref<1x16xf32, #tpu.memory_space<vmem>>, %arg4: memref<16x32xf32, #tpu.memory_space<vmem>>, %arg5: memref<1x32xf32, #tpu.memory_space<vmem>>, %arg6: memref<16x32xf32, #tpu.memory_space<vmem>>) attributes {dimension_semantics = [#tpu.dimension_semantics<parallel>], iteration_bounds = array<i64: 1>, scalar_prefetch = 0 : i64, scratch_operands = 0 : i64, tpu.core_type = #tpu.core_type<tc>, window_params = [{transform_indices = @transform_0, window_bounds = array<i64: 16, 32>}, {pipeline_mode = #tpu.pipeline_mode<synchronous>, transform_indices = @transform_1, window_bounds = array<i64: 32, 16>}, {pipeline_mode = #tpu.pipeline_mode<synchronous>, transform_indices = @transform_2, window_bounds = array<i64: 1, 16>}, {pipeline_mode = #tpu.pipeline_mode<synchronous>, transform_indices = @transform_3, window_bounds = array<i64: 16, 32>}, {pipeline_mode = #tpu.pipeline_mode<synchronous>, transform_indices = @transform_4, window_bounds = array<i64: 1, 32>}, {transform_indices = @transform_5, window_bounds = array<i64: 16, 32>}]} {
    %c0 = arith.constant 0 : index
    %c0_0 = arith.constant 0 : index
    %0 = vector.load %arg1[%c0, %c0_0] : memref<16x32xf32, #tpu.memory_space<vmem>>, vector<16x32xf32>
    %c0_1 = arith.constant 0 : index
    %c0_2 = arith.constant 0 : index
    %1 = vector.load %arg2[%c0_1, %c0_2] : memref<32x16xf32, #tpu.memory_space<vmem>>, vector<32x16xf32>
    %cst = arith.constant dense<0.000000e+00> : vector<16x16xf32>
    %2 = tpu.matmul %0, %1, %cst {dimension_numbers = #tpu.dot_dimension_numbers<[1], [0], [0], [1], [0, 0, 1, 1], [], []>} : vector<16x32xf32>, vector<32x16xf32>, vector<16x16xf32> -> vector<16x16xf32>
    %c0_3 = arith.constant 0 : index
    %c0_4 = arith.constant 0 : index
    %3 = vector.load %arg3[%c0_3, %c0_4] : memref<1x16xf32, #tpu.memory_space<vmem>>, vector<1x16xf32>
    %4 = vector.broadcast %3 : vector<1x16xf32> to vector<16x16xf32>
    %5 = arith.addf %2, %4 : vector<16x16xf32>
    %cst_5 = arith.constant 0.000000e+00 : f32
    %6 = vector.broadcast %cst_5 : f32 to vector<16x16xf32>
    %7 = arith.maximumf %5, %6 : vector<16x16xf32>
    %c0_6 = arith.constant 0 : index
    %c0_7 = arith.constant 0 : index
    %8 = vector.load %arg4[%c0_6, %c0_7] : memref<16x32xf32, #tpu.memory_space<vmem>>, vector<16x32xf32>
    %cst_8 = arith.constant dense<0.000000e+00> : vector<16x32xf32>
    %9 = tpu.matmul %7, %8, %cst_8 {dimension_numbers = #tpu.dot_dimension_numbers<[1], [0], [0], [1], [0, 0, 1, 1], [], []>} : vector<16x16xf32>, vector<16x32xf32>, vector<16x32xf32> -> vector<16x32xf32>
    %c0_9 = arith.constant 0 : index
    %c0_10 = arith.constant 0 : index
    %10 = vector.load %arg5[%c0_9, %c0_10] : memref<1x32xf32, #tpu.memory_space<vmem>>, vector<1x32xf32>
    %11 = vector.broadcast %10 : vector<1x32xf32> to vector<16x32xf32>
    %12 = arith.addf %9, %11 : vector<16x32xf32>
    %c0_11 = arith.constant 0 : index
    %c0_12 = arith.constant 0 : index
    %13 = vector.load %arg6[%c0_11, %c0_12] : memref<16x32xf32, #tpu.memory_space<vmem>>, vector<16x32xf32>
    tpu.vector_store %arg6[%c0_11, %c0_12], %12 {strides = array<i32>} : memref<16x32xf32, #tpu.memory_space<vmem>>, vector<16x32xf32>,
    return
  }
  func.func @transform_0(%arg0: i32) -> (i32, i32) {
    %c0_i32 = arith.constant 0 : i32
    %c0_i32_0 = arith.constant 0 : i32
    return %arg0, %c0_i32 : i32, i32
  }
  func.func @transform_1(%arg0: i32) -> (i32, i32) {
    %c0_i32 = arith.constant 0 : i32
    %c0_i32_0 = arith.constant 0 : i32
    %c0_i32_1 = arith.constant 0 : i32
    return %c0_i32, %c0_i32_0 : i32, i32
  }
  func.func @transform_2(%arg0: i32) -> (i32, i32) {
    %c0_i32 = arith.constant 0 : i32
    %c0_i32_0 = arith.constant 0 : i32
    %c0_i32_1 = arith.constant 0 : i32
    return %c0_i32, %c0_i32_0 : i32, i32
  }
  func.func @transform_3(%arg0: i32) -> (i32, i32) {
    %c0_i32 = arith.constant 0 : i32
    %c0_i32_0 = arith.constant 0 : i32
    %c0_i32_1 = arith.constant 0 : i32
    return %c0_i32, %c0_i32_0 : i32, i32
  }
  func.func @transform_4(%arg0: i32) -> (i32, i32) {
    %c0_i32 = arith.constant 0 : i32
    %c0_i32_0 = arith.constant 0 : i32
    %c0_i32_1 = arith.constant 0 : i32
    return %c0_i32, %c0_i32_0 : i32, i32
  }
  func.func @transform_5(%arg0: i32) -> (i32, i32) {
    %c0_i32 = arith.constant 0 : i32
    %c0_i32_0 = arith.constant 0 : i32
    return %arg0, %c0_i32 : i32, i32
  }
}

</mosaic_0001>

<bundles_post_ra>
// kernel: tpu_custom_call.1
= control target key start
LH: loop header
LB: loop body
LE: loop exit
PB: predicated region body
PF: predicated region fallthrough
CT: control target
= control target key end

     0   :  { %vm34_vm0 = vcmask 261120   ;;  %s379_s0 = inlined_call_operand.vmem [shape: f32[16,32], index: 0, kind: input, shape index: {}]   ;;  %s380_s1 = inlined_call_operand.vmem [shape: f32[32,16], index: 1, kind: input, shape index: {}]   ;;  %s381_s2 = inlined_call_operand.vmem [shape: f32[1,16], index: 2, kind: input, shape index: {}]   ;;  %s382_s3 = inlined_call_operand.vmem [shape: f32[16,32], index: 3, kind: input, shape index: {}]   ;;  %s383_s4 = inlined_call_operand.vmem [shape: f32[1,32], index: 4, kind: input, shape index: {}]   ;;  %s384_s5 = inlined_call_operand.hbm [shape: f32[16,32], index: 5, kind: output, shape index: {}]  }
   0x1   :  { %v23_v0 = vld [vmem:[%s380_s1] sm:$0xff]  ;;  %v24_v1 = vld [vmem:[%s380_s1 + $0x8] sm:$0xff]  ;;  %v25_v2 = vld [vmem:[%s380_s1 + $0x10] sm:$0xff] }
   0x2   :  { %v261_v3 = vpack.c.bf16 %v24_v1, %v23_v0  ;;  %v26_v4 = vld [vmem:[%s380_s1 + $0x18] sm:$0xff]  ;;  %v21_v5 = vld [vmem:[%s379_s0] sm:$0xff] }
   0x3   :  { %v265_v6 = vpack.c.bf16 %v26_v4, %v25_v2  ;;  %251 = vmatprep.mubr.msk.f32.mxu0 %vm34_vm0, %v21_v5 }
   0x4   :  { %10 = vsyncpa [#allocation3], 0  ;;  %262 = vmatprep.subr.bf16.mxu0 %v261_v3  ;;  %v22_v7 = vld [vmem:[%s379_s0 + $0x8] sm:$0xff]  ;;  %v118_v8 = vld [vmem:[%s382_s3] sm:$0xff]  ;;  %vm127_vm1 = vcmask 130048  }
   0x5   :  { %264 = vmatpush3.bf16.msra.mxu0 %v261_v3  ;;  %v119_v9 = vld [vmem:[%s382_s3 + $0x8] sm:$0xff]  ;;  %v227_v11 = vld [vmem:[%s381_s2] ss:$0 sm:$0xff]  ;;  %s300_s3 = smov [#allocation2]  }
   0x6   :  { %266 = vmatprep.subr.bf16.mxu0 %v265_v6  ;;  %v269_v10 = vpack.c.bf16 %v119_v9, %v118_v8  ;;  %v230_v18 = vld [vmem:[%s383_s4] ss:$0 sm:$0xff]  ;;  %s216_s11 = sshll.u32 %s300_s3, 4  ;;  %s217_s11 = int_to_ptr.vmem [resolvable:$true] %s216_s11 }
   0x7   :  { %s276_s2 = scalar_lea.vmem %s217_s11, 256  ;;  %p281_p1 = scmp.lt.s32.totalorder %s217_s11, %s217_s11 }
   0x8   :  { %270 = vmatprep.subr.bf16.mxu1 %v269_v10  ;;  %p277_p0 = scmp.ne.s32.totalorder %s217_s11, %s276_s2  ;;  %p282_p2 = scmp.lt.s32.totalorder %s276_s2, %s276_s2 }
   0x9   :  { %268 = vmatpush3.bf16.msra.mxu0 %v265_v6  ;;  %272 = vmatpush3.bf16.msra.mxu1 %v269_v10 }
   0xa   :  { %p283_p3 = por %p282_p2, %p281_p1 }
   0xc   :  { %252 = vmatmul.mubr.msk.f32.vlgmr.msra.gmra.mrb[0].mxu0 %vm34_vm0, %v22_v7  ;;  %p284_p4 = pnand %p283_p3, %p277_p0 }
  0xdf   :  { %v253_v12 = vpop.f32.mrb[0].mxu0 }
  0xe0   :  { %v113_v13 = vadd.f32 %v253_v12, %v227_v11  ;;  %v107_v14 = vpop.f32.mrb[1].mxu0 }
  0xe1   :  { %v108_v15 = vadd.f32 %v227_v11, %v107_v14 }
  0xe2   :  { %v117_v17 = vmax.f32 %v113_v13, 0.0 }
  0xe3   :  { %v116_v16 = vmax.f32 %v108_v15, 0.0 }
  0xe5   :  { %258 = vmatprep.mubr.msk.f32.mxu1 %vm127_vm1, %v116_v16 }
  0xe6   :  { %259 = vmatmul.mubr.msk.f32.vlgmr.msra.gmra.mrb[0].mxu1 %vm127_vm1, %v117_v17 }
 0x1b9   :  { %v260_v19 = vpop.f32.mrb[0].mxu1 }
 0x1ba   :  { %v206_v20 = vadd.f32 %v260_v19, %v230_v18  ;;  %v200_v21 = vpop.f32.mrb[1].mxu1 }
 0x1bb   :  { %v201_v22 = vadd.f32 %v230_v18, %v200_v21 }
 0x1bc   :  { %210 = vst.msk [vmem:[#allocation2 + $0x8] sm:$0xff] %vm34_vm0, %v206_v20 }
 0x1bd   :  { %209 = vst.msk [vmem:[#allocation2] sm:$0xff] %vm34_vm0, %v201_v22 }
 0x1be   :  { %287 = shalt.err (!%p284_p4)
}
 0x1bf   :  { %s288_s13 = scalar_lea.hbm %s384_s5, 256 }
 0x1c0   :  { %p289_p5 = scmp.ne.s32.totalorder %s384_s5, %s288_s13  ;;  %p292_p6 = scmp.lt.u32.totalorder %s288_s13, %s384_s5 }
 0x1c2   :  { %p294_p7 = pnand %p292_p6, %p289_p5 }
 0x1c4   :  { %297 = shalt.err (!%p294_p7)
}
 0x1c5   :  { %s301_s18 = smov 128   ;;  %s302_s19 = smov 8  }
 0x1c6   :  { %222 = dma.vmem_to_hbm [thread:$0]  %s217_s11, 256, %s384_s5, [#allocation3], %s301_s18, %s301_s18, %s302_s19  }
 0x1c7   :  { %298 = dma.done.wait [#allocation3], 256  }
 0x1c8   :  { %299 = vsyncadd [#allocation3], 4294967040 }
 0x1c9   :  { %226 = vsyncpa [#allocation3], 1 }

// kernel: tpu_custom_call.1
= control target key start
LH: loop header
LB: loop body
LE: loop exit
PB: predicated region body
PF: predicated region fallthrough
CT: control target
= control target key end

     0   :  { %vm34_vm0 = vcmask 261120   ;;  %s379_s0 = inlined_call_operand.vmem [shape: f32[16,32], index: 0, kind: input, shape index: {}]   ;;  %s380_s1 = inlined_call_operand.vmem [shape: f32[32,16], index: 1, kind: input, shape index: {}]   ;;  %s381_s2 = inlined_call_operand.vmem [shape: f32[1,16], index: 2, kind: input, shape index: {}]   ;;  %s382_s3 = inlined_call_operand.vmem [shape: f32[16,32], index: 3, kind: input, shape index: {}]   ;;  %s383_s4 = inlined_call_operand.vmem [shape: f32[1,32], index: 4, kind: input, shape index: {}]   ;;  %s384_s5 = inlined_call_operand.hbm [shape: f32[16,32], index: 5, kind: output, shape index: {}]  }
   0x1   :  { %v23_v0 = vld [vmem:[%s380_s1] sm:$0xff]  ;;  %v24_v1 = vld [vmem:[%s380_s1 + $0x8] sm:$0xff]  ;;  %v25_v2 = vld [vmem:[%s380_s1 + $0x10] sm:$0xff] }
   0x2   :  { %v261_v3 = vpack.c.bf16 %v24_v1, %v23_v0  ;;  %v26_v4 = vld [vmem:[%s380_s1 + $0x18] sm:$0xff]  ;;  %v21_v5 = vld [vmem:[%s379_s0] sm:$0xff] }
   0x3   :  { %v265_v6 = vpack.c.bf16 %v26_v4, %v25_v2  ;;  %251 = vmatprep.mubr.msk.f32.mxu0 %vm34_vm0, %v21_v5 }
   0x4   :  { %10 = vsyncpa [#allocation3], 0  ;;  %262 = vmatprep.subr.bf16.mxu0 %v261_v3  ;;  %v22_v7 = vld [vmem:[%s379_s0 + $0x8] sm:$0xff]  ;;  %v118_v8 = vld [vmem:[%s382_s3] sm:$0xff]  ;;  %vm127_vm1 = vcmask 130048  }
   0x5   :  { %264 = vmatpush3.bf16.msra.mxu0 %v261_v3  ;;  %v119_v9 = vld [vmem:[%s382_s3 + $0x8] sm:$0xff]  ;;  %v227_v11 = vld [vmem:[%s381_s2] ss:$0 sm:$0xff]  ;;  %s300_s3 = smov [#allocation2]  }
   0x6   :  { %266 = vmatprep.subr.bf16.mxu0 %v265_v6  ;;  %v269_v10 = vpack.c.bf16 %v119_v9, %v118_v8  ;;  %v230_v18 = vld [vmem:[%s383_s4] ss:$0 sm:$0xff]  ;;  %s216_s11 = sshll.u32 %s300_s3, 4  ;;  %s217_s11 = int_to_ptr.vmem [resolvable:$true] %s216_s11 }
   0x7   :  { %s276_s2 = scalar_lea.vmem %s217_s11, 256  ;;  %p281_p1 = scmp.lt.s32.totalorder %s217_s11, %s217_s11 }
   0x8   :  { %270 = vmatprep.subr.bf16.mxu1 %v269_v10  ;;  %p277_p0 = scmp.ne.s32.totalorder %s217_s11, %s276_s2  ;;  %p282_p2 = scmp.lt.s32.totalorder %s276_s2, %s276_s2 }
   0x9   :  { %268 = vmatpush3.bf16.msra.mxu0 %v265_v6  ;;  %272 = vmatpush3.bf16.msra.mxu1 %v269_v10 }
   0xa   :  { %p283_p3 = por %p282_p2, %p281_p1 }
   0xc   :  { %252 = vmatmul.mubr.msk.f32.vlgmr.msra.gmra.mrb[0].mxu0 %vm34_vm0, %v22_v7  ;;  %p284_p4 = pnand %p283_p3, %p277_p0 }
  0xdf   :  { %v253_v12 = vpop.f32.mrb[0].mxu0 }
  0xe0   :  { %v113_v13 = vadd.f32 %v253_v12, %v227_v11  ;;  %v107_v14 = vpop.f32.mrb[1].mxu0 }
  0xe1   :  { %v108_v15 = vadd.f32 %v227_v11, %v107_v14 }
  0xe2   :  { %v117_v17 = vmax.f32 %v113_v13, 0.0 }
  0xe3   :  { %v116_v16 = vmax.f32 %v108_v15, 0.0 }
  0xe5   :  { %258 = vmatprep.mubr.msk.f32.mxu1 %vm127_vm1, %v116_v16 }
  0xe6   :  { %259 = vmatmul.mubr.msk.f32.vlgmr.msra.gmra.mrb[0].mxu1 %vm127_vm1, %v117_v17 }
 0x1b9   :  { %v260_v19 = vpop.f32.mrb[0].mxu1 }
 0x1ba   :  { %v206_v20 = vadd.f32 %v260_v19, %v230_v18  ;;  %v200_v21 = vpop.f32.mrb[1].mxu1 }
 0x1bb   :  { %v201_v22 = vadd.f32 %v230_v18, %v200_v21 }
 0x1bc   :  { %210 = vst.msk [vmem:[#allocation2 + $0x8] sm:$0xff] %vm34_vm0, %v206_v20 }
 0x1bd   :  { %209 = vst.msk [vmem:[#allocation2] sm:$0xff] %vm34_vm0, %v201_v22 }
 0x1be   :  { %287 = shalt.err (!%p284_p4)
}
 0x1bf   :  { %s288_s13 = scalar_lea.hbm %s384_s5, 256 }
 0x1c0   :  { %p289_p5 = scmp.ne.s32.totalorder %s384_s5, %s288_s13  ;;  %p292_p6 = scmp.lt.u32.totalorder %s288_s13, %s384_s5 }
 0x1c2   :  { %p294_p7 = pnand %p292_p6, %p289_p5 }
 0x1c4   :  { %297 = shalt.err (!%p294_p7)
}
 0x1c5   :  { %s301_s18 = smov 128   ;;  %s302_s19 = smov 8  }
 0x1c6   :  { %222 = dma.vmem_to_hbm [thread:$0]  %s217_s11, 256, %s384_s5, [#allocation3], %s301_s18, %s301_s18, %s302_s19  }
 0x1c7   :  { %298 = dma.done.wait [#allocation3], 256  }
 0x1c8   :  { %299 = vsyncadd [#allocation3], 4294967040 }
 0x1c9   :  { %226 = vsyncpa [#allocation3], 1 }

</bundles_post_ra>
